<compile_context>
chip_gen: v7x
topology: tpu7x:2x2x1
jax: 0.10.0
libtpu: 0.0.40
codegen_flags: <defaults>
</compile_context>

<pallas_src>
import functools
import math

import numpy as np
import jax
import jax.numpy as jnp
from jax.experimental import pallas as pl
from jax.experimental.pallas import tpu as pltpu


def _round_up(x, m):
    return ((x + m - 1) // m) * m


def _interp_matrix(n_in, pad):
    """(2*n_in + 2*pad, n_in) bilinear upsample-by-2 matrix, align_corners=True.

    Conv zero-padding is folded in as `pad` zero rows at each border.
    """
    n_out = 2 * n_in
    m = np.zeros((n_out + 2 * pad, n_in), dtype=np.float32)
    if n_in == 1:
        m[pad:pad + n_out, 0] = 1.0
        return m
    scale = (n_in - 1) / (n_out - 1)
    for o in range(n_out):
        s = o * scale
        i0 = min(int(np.floor(s)), n_in - 1)
        f = s - i0
        i1 = min(i0 + 1, n_in - 1)
        m[pad + o, i0] += 1.0 - f
        m[pad + o, i1] += f
    return m


# ------------------------------ Pallas kernel -------------------------------

def _deconv_fused_kernel(x_ref, uh_ref, f_ref, b_ref, o_ref):
    # x:  (H, Cin_p*W)            bf16   per-image input, channel-major lanes
    # uh: (Hp, H)                 bf16   row-upsample matrix (pad folded in)
    # f:  (kh, Cin_p*W, Wo*Cout)  bf16   col-upsample + W-taps + Cin folded
    # b:  (1, Wo*Cout)            f32    bias tiled over Wo
    # o:  (Ho, Wo*Cout)           f32
    kh = f_ref.shape[0]
    ho = o_ref.shape[0]

    # Row (H) bilinear upsample: one MXU matmul, result stays in VMEM.
    t = jnp.dot(uh_ref[...], x_ref[...],
                preferred_element_type=jnp.float32)        # (Hp, Cin_p*W) f32
    t = t.astype(jnp.bfloat16)

    # Column upsample + all kw taps + Cin contraction folded into f[dy]:
    # kh dense-K (=Cin_p*W) matmuls accumulated into a small f32 buffer.
    acc = jnp.zeros(o_ref.shape, jnp.float32)
    for dy in range(kh):                                   # kh == 3, static
        acc = acc + jnp.dot(t[dy:dy + ho, :], f_ref[dy],
                            preferred_element_type=jnp.float32)
    o_ref[...] = (acc + b_ref[...]).astype(o_ref.dtype)


# ------------------------------ module forward ------------------------------

def deconv_forward(params, x_nchw, padding=0):
    """x: (N, Cin, H, W) f32 -> (N, Cout, 2H+2p-kh+1, 2W+2p-kw+1) f32."""
    n, cin, h, w = x_nchw.shape
    wt = params['w']            # (kh, kw, Cin, Cout), HWIO
    bias = params['b']          # (Cout,)
    kh, kw, _, cout = wt.shape

    hp, wp = 2 * h + 2 * padding, 2 * w + 2 * padding
    ho, wo = hp - kh + 1, wp - kw + 1

    # Sublane-friendly Cin padding (zero channels are exact no-ops); no Cout
    # padding needed since Cout lives in lanes fused with Wo.
    cin_p = _round_up(cin, 8)

    # Input image as (N, H, Cin_p*W): lane dim = Cin_p*W (128), channel-major.
    x_p = jnp.pad(x_nchw, ((0, 0), (0, cin_p - cin), (0, 0), (0, 0)))
    x2 = jnp.transpose(x_p, (0, 2, 1, 3)).reshape(n, h, cin_p * w)
    x2 = x2.astype(jnp.bfloat16)

    # Row-upsample matrix (zero rows at borders fold the conv padding).
    uh = jnp.asarray(_interp_matrix(h, padding), jnp.bfloat16)      # (Hp, H)

    # Fold column upsample + W conv taps + Cin into kh matrices:
    #   F[dy, (ci,w_in), (wo,co)] = sum_dx U_w[wo+dx, w_in] * wt[dy,dx,ci,co]
    uw = _interp_matrix(w, padding)                                  # (Wp, W)
    v = np.stack([uw[dx:dx + wo, :] for dx in range(kw)])            # (kw,Wo,W)
    wt_p = jnp.pad(wt, ((0, 0), (0, 0), (0, cin_p - cin), (0, 0)))
    f = jnp.einsum('xow,yxcd->ycwod', jnp.asarray(v), wt_p)          # weight-only
    f = f.reshape(kh, cin_p * w, wo * cout).astype(jnp.bfloat16)

    bias_row = jnp.tile(bias, (wo,)).reshape(1, wo * cout).astype(jnp.float32)

    out = pl.pallas_call(
        _deconv_fused_kernel,
        out_shape=jax.ShapeDtypeStruct((n, ho, wo * cout), jnp.float32),
        grid=(n,),
        in_specs=[pl.BlockSpec((None, h, cin_p * w), lambda i: (i, 0, 0)),
                  pl.BlockSpec((hp, h), lambda i: (0, 0)),
                  pl.BlockSpec((kh, cin_p * w, wo * cout), lambda i: (0, 0, 0)),
                  pl.BlockSpec((1, wo * cout), lambda i: (0, 0))],
        out_specs=pl.BlockSpec((None, ho, wo * cout), lambda i: (i, 0, 0)),
        compiler_params=pltpu.CompilerParams(
            dimension_semantics=("parallel",),
            vmem_limit_bytes=32 * 1024 * 1024),
    )(x2, uh, f, bias_row)

    out = out.reshape(n, ho, wo, cout)           # metadata-only split of lanes
    return jnp.transpose(out, (0, 3, 1, 2))      # back to NCHW


def init_params(key, cin, cout, kernel_size=3):
    # nn.Conv2d default init: U(-1/sqrt(fan_in), 1/sqrt(fan_in)).
    # NOTE: weights are kept in HWIO; real PyTorch Conv2d weights (OIHW) must
    # be transposed (2, 3, 1, 0) before use.
    k1, k2 = jax.random.split(key)
    fan_in = cin * kernel_size * kernel_size
    bound = 1.0 / math.sqrt(fan_in)
    w = jax.random.uniform(k1, (kernel_size, kernel_size, cin, cout),
                           jnp.float32, -bound, bound)
    b = jax.random.uniform(k2, (cout,), jnp.float32, -bound, bound)
    return {'w': w, 'b': b}


# --------------------------- numpy (f64) reference ---------------------------

def _reference_deconv(x, wt, bias, padding):
    n, c, h, w = x.shape
    kh, kw, _, cout = wt.shape
    uh = _interp_matrix(h, padding).astype(np.float64)
    uw = _interp_matrix(w, padding).astype(np.float64)
    up = np.einsum('ph,nchw->ncpw', uh, x)
    up = np.einsum('qw,ncpw->ncpq', uw, up)          # (n, c, Hp, Wp)
    hp, wp = up.shape[2], up.shape[3]
    ho, wo = hp - kh + 1, wp - kw + 1
    out = np.zeros((n, cout, ho, wo))
    for dy in range(kh):
        for dx in range(kw):
            patch = up[:, :, dy:dy + ho, dx:dx + wo]
            out += np.einsum('nchw,cd->ndhw', patch, wt[dy, dx])
    return out + bias[None, :, None, None]


if __name__ == "__main__":
    key = jax.random.PRNGKey(0)
    kx, kp = jax.random.split(key)

    n, cin, cout = 2, 4, 8
    h = w = 16
    padding = 0          # nn.Conv2d default used by the module

    x = jax.random.normal(kx, (n, cin, h, w), jnp.float32)
    params = init_params(kp, cin, cout, kernel_size=3)

    fwd = jax.jit(functools.partial(deconv_forward, padding=padding))
    out = jax.block_until_ready(fwd(params, x))

    ho = wo = 2 * h + 2 * padding - 2
    assert out.shape == (n, cout, ho, wo), out.shape

    ref = _reference_deconv(np.asarray(x, np.float64),
                            np.asarray(params['w'], np.float64),
                            np.asarray(params['b'], np.float64),
                            padding)
    np.testing.assert_allclose(np.asarray(out, np.float64), ref,
                               rtol=5e-2, atol=5e-2)
    print("KERNEL_OK")
</pallas_src>

<mosaic_0001>
module attributes {stable_mosaic.version = 11 : i64} {
  func.func @_deconv_fused_kernel(%arg0: i32, %arg1: memref<1x16x128xbf16, #tpu.memory_space<vmem>>, %arg2: memref<32x16xbf16, #tpu.memory_space<vmem>>, %arg3: memref<3x128x240xbf16, #tpu.memory_space<vmem>>, %arg4: memref<1x240xf32, #tpu.memory_space<vmem>>, %arg5: memref<1x30x240xf32, #tpu.memory_space<vmem>>) attributes {dimension_semantics = [#tpu.dimension_semantics<parallel>], iteration_bounds = array<i64: 2>, scalar_prefetch = 0 : i64, scratch_operands = 0 : i64, tpu.core_type = #tpu.core_type<tc>, window_params = [{transform_indices = @transform_0, window_bounds = array<i64: 1, 16, 128>}, {pipeline_mode = #tpu.pipeline_mode<synchronous>, transform_indices = @transform_1, window_bounds = array<i64: 32, 16>}, {pipeline_mode = #tpu.pipeline_mode<synchronous>, transform_indices = @transform_2, window_bounds = array<i64: 3, 128, 240>}, {pipeline_mode = #tpu.pipeline_mode<synchronous>, transform_indices = @transform_3, window_bounds = array<i64: 1, 240>}, {transform_indices = @transform_4, window_bounds = array<i64: 1, 30, 240>}]} {
    %c0 = arith.constant 0 : index
    %c0_0 = arith.constant 0 : index
    %0 = vector.load %arg2[%c0, %c0_0] : memref<32x16xbf16, #tpu.memory_space<vmem>>, vector<32x16xbf16>
    %c0_1 = arith.constant 0 : index
    %c0_2 = arith.constant 0 : index
    %c0_3 = arith.constant 0 : index
    %1 = vector.load %arg1[%c0_1, %c0_2, %c0_3] : memref<1x16x128xbf16, #tpu.memory_space<vmem>>, vector<1x16x128xbf16>
    %2 = vector.shape_cast %1 : vector<1x16x128xbf16> to vector<16x128xbf16>
    %cst = arith.constant dense<0.000000e+00> : vector<32x128xf32>
    %3 = tpu.matmul %0, %2, %cst {dimension_numbers = #tpu.dot_dimension_numbers<[1], [0], [0], [1], [0, 0, 1, 1], [], []>} : vector<32x16xbf16>, vector<16x128xbf16>, vector<32x128xf32> -> vector<32x128xf32>
    %4 = arith.truncf %3 : vector<32x128xf32> to vector<32x128xbf16>
    %cst_4 = arith.constant 0.000000e+00 : f32
    %5 = vector.broadcast %cst_4 : f32 to vector<30x240xf32>
    %6 = vector.extract_strided_slice %4 {offsets = [0, 0], sizes = [30, 128], strides = [1, 1]} : vector<32x128xbf16> to vector<30x128xbf16>
    %c0_5 = arith.constant 0 : index
    %c0_6 = arith.constant 0 : index
    %c0_7 = arith.constant 0 : index
    %7 = vector.load %arg3[%c0_5, %c0_6, %c0_7] : memref<3x128x240xbf16, #tpu.memory_space<vmem>>, vector<1x128x240xbf16>
    %8 = vector.shape_cast %7 : vector<1x128x240xbf16> to vector<128x240xbf16>
    %cst_8 = arith.constant dense<0.000000e+00> : vector<30x240xf32>
    %9 = tpu.matmul %6, %8, %cst_8 {dimension_numbers = #tpu.dot_dimension_numbers<[1], [0], [0], [1], [0, 0, 1, 1], [], []>} : vector<30x128xbf16>, vector<128x240xbf16>, vector<30x240xf32> -> vector<30x240xf32>
    %10 = arith.addf %5, %9 : vector<30x240xf32>
    %11 = vector.extract_strided_slice %4 {offsets = [1, 0], sizes = [30, 128], strides = [1, 1]} : vector<32x128xbf16> to vector<30x128xbf16>
    %c1 = arith.constant 1 : index
    %c0_9 = arith.constant 0 : index
    %c0_10 = arith.constant 0 : index
    %12 = vector.load %arg3[%c1, %c0_9, %c0_10] : memref<3x128x240xbf16, #tpu.memory_space<vmem>>, vector<1x128x240xbf16>
    %13 = vector.shape_cast %12 : vector<1x128x240xbf16> to vector<128x240xbf16>
    %cst_11 = arith.constant dense<0.000000e+00> : vector<30x240xf32>
    %14 = tpu.matmul %11, %13, %cst_11 {dimension_numbers = #tpu.dot_dimension_numbers<[1], [0], [0], [1], [0, 0, 1, 1], [], []>} : vector<30x128xbf16>, vector<128x240xbf16>, vector<30x240xf32> -> vector<30x240xf32>
    %15 = arith.addf %10, %14 : vector<30x240xf32>
    %16 = vector.extract_strided_slice %4 {offsets = [2, 0], sizes = [30, 128], strides = [1, 1]} : vector<32x128xbf16> to vector<30x128xbf16>
    %c2 = arith.constant 2 : index
    %c0_12 = arith.constant 0 : index
    %c0_13 = arith.constant 0 : index
    %17 = vector.load %arg3[%c2, %c0_12, %c0_13] : memref<3x128x240xbf16, #tpu.memory_space<vmem>>, vector<1x128x240xbf16>
    %18 = vector.shape_cast %17 : vector<1x128x240xbf16> to vector<128x240xbf16>
    %cst_14 = arith.constant dense<0.000000e+00> : vector<30x240xf32>
    %19 = tpu.matmul %16, %18, %cst_14 {dimension_numbers = #tpu.dot_dimension_numbers<[1], [0], [0], [1], [0, 0, 1, 1], [], []>} : vector<30x128xbf16>, vector<128x240xbf16>, vector<30x240xf32> -> vector<30x240xf32>
    %20 = arith.addf %15, %19 : vector<30x240xf32>
    %c0_15 = arith.constant 0 : index
    %c0_16 = arith.constant 0 : index
    %21 = vector.load %arg4[%c0_15, %c0_16] : memref<1x240xf32, #tpu.memory_space<vmem>>, vector<1x240xf32>
    %22 = vector.broadcast %21 : vector<1x240xf32> to vector<30x240xf32>
    %23 = arith.addf %20, %22 : vector<30x240xf32>
    %c0_17 = arith.constant 0 : index
    %c0_18 = arith.constant 0 : index
    %c0_19 = arith.constant 0 : index
    %24 = vector.load %arg5[%c0_17, %c0_18, %c0_19] : memref<1x30x240xf32, #tpu.memory_space<vmem>>, vector<1x30x240xf32>
    %25 = vector.shape_cast %24 : vector<1x30x240xf32> to vector<30x240xf32>
    %26 = vector.shape_cast %23 : vector<30x240xf32> to vector<1x30x240xf32>
    tpu.vector_store %arg5[%c0_17, %c0_18, %c0_19], %26 {strides = array<i32>} : memref<1x30x240xf32, #tpu.memory_space<vmem>>, vector<1x30x240xf32>,
    return
  }
  func.func @transform_0(%arg0: i32) -> (i32, i32, i32) {
    %c0_i32 = arith.constant 0 : i32
    %c0_i32_0 = arith.constant 0 : i32
    %c0_i32_1 = arith.constant 0 : i32
    return %arg0, %c0_i32, %c0_i32_0 : i32, i32, i32
  }
  func.func @transform_1(%arg0: i32) -> (i32, i32) {
    %c0_i32 = arith.constant 0 : i32
    %c0_i32_0 = arith.constant 0 : i32
    %c0_i32_1 = arith.constant 0 : i32
    return %c0_i32, %c0_i32_0 : i32, i32
  }
  func.func @transform_2(%arg0: i32) -> (i32, i32, i32) {
    %c0_i32 = arith.constant 0 : i32
    %c0_i32_0 = arith.constant 0 : i32
    %c0_i32_1 = arith.constant 0 : i32
    %c0_i32_2 = arith.constant 0 : i32
    return %c0_i32, %c0_i32_0, %c0_i32_1 : i32, i32, i32
  }
  func.func @transform_3(%arg0: i32) -> (i32, i32) {
    %c0_i32 = arith.constant 0 : i32
    %c0_i32_0 = arith.constant 0 : i32
    %c0_i32_1 = arith.constant 0 : i32
    return %c0_i32, %c0_i32_0 : i32, i32
  }
  func.func @transform_4(%arg0: i32) -> (i32, i32, i32) {
    %c0_i32 = arith.constant 0 : i32
    %c0_i32_0 = arith.constant 0 : i32
    %c0_i32_1 = arith.constant 0 : i32
    return %arg0, %c0_i32, %c0_i32_0 : i32, i32, i32
  }
}

</mosaic_0001>

<bundles_post_ra>
// kernel: tile.8
= control target key start
LH: loop header
LB: loop body
LE: loop exit
PB: predicated region body
PF: predicated region fallthrough
CT: control target
= control target key end

     0   :  { %s40_s0 = inlined_call_operand.vmem [shape: f32[8], index: 0, kind: input, shape index: {}]   ;;  %s41_s1 = inlined_call_operand.vmem [shape: f32[30,8], index: 1, kind: output, shape index: {}]  }
   0x1   :  { %v4_v0 = vld [vmem:[%s40_s0] ss:$0 sm:$0xff] }
   0x2   :  { %5 = vst [vmem:[%s41_s1] sm:$0xff] %v4_v0  ;;  %12 = vst [vmem:[%s41_s1 + $0x8] sm:$0xff] %v4_v0 }
   0x3   :  { %13 = vst [vmem:[%s41_s1 + $0x10] sm:$0xff] %v4_v0  ;;  %14 = vst [vmem:[%s41_s1 + $0x18] sm:$0xff] %v4_v0 }

// kernel: tile.9
= control target key start
LH: loop header
LB: loop body
LE: loop exit
PB: predicated region body
PF: predicated region fallthrough
CT: control target
= control target key end

     0   :  { %s19_s8 = smov 3  ;;  %s151_s9 = smov 120   ;;  %vm4_vm0 = vcmask 64512   ;;  %vm10_vm1 = vcmask 1048512   ;;  %vm16_vm2 = vcmask 982912   ;;  %vm23_vm3 = vcmask 917312   ;;  %s230_s0 = inlined_call_operand.vmem [shape: f32[30,8], index: 0, kind: input, shape index: {}]   ;;  %s231_s1 = inlined_call_operand.vmem [shape: f32[1,240], index: 1, kind: output, shape index: {}]  }
   0x1   :  { %v120_v0 = vld [vmem:[%s230_s0 + $0xf] sm:$0x1]   ;;  %v122_v1 = vld [vmem:[%s230_s0 + $0xd] ss:$16 sm:%s19_s8]   ;;  %s152_s12 = smov 104   ;;  %s26_s15 = smov 3 }
   0x2   :  { %8 = vrot.lane.b32.xlu0 %v120_v0, %s151_s9  ;;  %21 = vrot.lane.b32.xlu1 %v122_v1, %s152_s12  ;;  %v121_v2 = vld [vmem:[%s230_s0 + $0xe] sm:$0x1]   ;;  %s33_s18 = smov 3  ;;  %s40_s19 = smov 3  ;;  %vm30_vm4 = vcmask 851712   ;;  %vm37_vm5 = vcmask 786112  }
   0x3   :  { %v123_v3 = vld [vmem:[%s230_s0 + $0xc] ss:$16 sm:%s26_s15]   ;;  %s153_s20 = smov 112   ;;  %s154_s21 = smov 96   ;;  %v124_v4 = vld [vmem:[%s230_s0 + $0xb] ss:$16 sm:%s33_s18]  }
   0x4   :  { %v125_v5 = vld [vmem:[%s230_s0 + $0xa] ss:$16 sm:%s40_s19]   ;;  %s47_s26 = smov 3  ;;  %s54_s27 = smov 3  ;;  %vm44_vm6 = vcmask 720512   ;;  %vm51_vm7 = vcmask 654912  }
   0x5   :  { %s155_s28 = smov 88   ;;  %s156_s29 = smov 80   ;;  %v126_v6 = vld [vmem:[%s230_s0 + $0x9] ss:$16 sm:%s47_s26]   ;;  %v127_v7 = vld [vmem:[%s230_s0 + $0x8] ss:$16 sm:%s54_s27]  }
   0x6   :  { %14 = vrot.lane.b32.xlu0 %v121_v2, %s153_s20  ;;  %28 = vrot.lane.b32.xlu1 %v123_v3, %s154_s21  ;;  %s61_s5 = smov 3  ;;  %s68_s6 = smov 3  ;;  %vm58_vm8 = vcmask 589312   ;;  %vm65_vm9 = vcmask 523712   ;;  %vm72_vm10 = vcmask 458112   ;;  %vm79_vm11 = vcmask 392512  }
   0x7   :  { %s157_s7 = smov 72   ;;  %s158_s8 = smov 64   ;;  %v128_v8 = vld [vmem:[%s230_s0 + $0x7] ss:$16 sm:%s61_s5]   ;;  %v129_v9 = vld [vmem:[%s230_s0 + $0x6] ss:$16 sm:%s68_s6]  }
   0x8   :  { %s2_s11 = smov 3  ;;  %s75_s14 = smov 3  ;;  %vm86_vm12 = vcmask 326912   ;;  %vm93_vm13 = vcmask 261312   ;;  %vm100_vm14 = vcmask 195712   ;;  %vm107_vm15 = vcmask 130112  }
   0x9   :  { %v3_v10 = vld [vmem:[%s230_s0] ss:$16 sm:%s2_s11]   ;;  %s82_s17 = smov 3  ;;  %s159_s18 = smov 56   ;;  %v130_v11 = vld [vmem:[%s230_s0 + $0x5] ss:$16 sm:%s75_s14]  }
   0xa   :  { %35 = vrot.lane.b32.xlu0 %v124_v4, %s155_s28  ;;  %42 = vrot.lane.b32.xlu1 %v125_v5, %s156_s29  ;;  %5 = vst.msk [vmem:[#allocation0] ss:$8 sm:$0x3] %vm4_vm0, %v3_v10   ;;  %s160_s19 = smov 48   ;;  %v131_v12 = vld [vmem:[%s230_s0 + $0x4] ss:$16 sm:%s82_s17]  }
   0xb   :  { %s89_s24 = smov 3  ;;  %s96_s25 = smov 3 }
   0xc   :  { %s161_s26 = smov 40   ;;  %s162_s27 = smov 32   ;;  %v132_v13 = vld [vmem:[%s230_s0 + $0x3] ss:$16 sm:%s89_s24]   ;;  %v133_v14 = vld [vmem:[%s230_s0 + $0x2] ss:$16 sm:%s96_s25]  }
   0xd   :  { %s103_s3 = smov 3  ;;  %s163_s4 = smov 24  }
   0xe   :  { %49 = vrot.lane.b32.xlu0 %v126_v6, %s157_s7  ;;  %56 = vrot.lane.b32.xlu1 %v127_v7, %s158_s8  ;;  %s164_s5 = smov 16   ;;  %v134_v15 = vld [vmem:[%s230_s0 + $0x1] ss:$16 sm:%s103_s3]   ;;  %s165_s0 = smov 8  }
  0x12   :  { %63 = vrot.lane.b32.xlu0 %v128_v8, %s159_s18  ;;  %70 = vrot.lane.b32.xlu1 %v129_v9, %s160_s19 }
  0x16   :  { %77 = vrot.lane.b32.xlu0 %v130_v11, %s161_s26  ;;  %84 = vrot.lane.b32.xlu1 %v131_v12, %s162_s27 }
  0x1a   :  { %91 = vrot.lane.b32.xlu0 %v132_v13, %s163_s4  ;;  %98 = vrot.lane.b32.xlu1 %v133_v14, %s164_s5 }
  0x1e   :  { %105 = vrot.lane.b32.xlu0 %v134_v15, %s165_s0 }
  0x74   :  { %v9_v16 = vpop.permute.xlu0 %8   ;;  %v22_v17 = vpop.permute.xlu1 %21  }
  0x75   :  { %11 = vst.msk [vmem:[#allocation0] sm:$0x1] %vm10_vm1, %v9_v16  }
  0x78   :  { %v15_v18 = vpop.permute.xlu0 %14   ;;  %v29_v19 = vpop.permute.xlu1 %28  }
  0x79   :  { %17 = vst.msk [vmem:[#allocation0] sm:$0x1] %vm16_vm2, %v15_v18  }
  0x7a   :  { %24 = vst.msk [vmem:[#allocation0] ss:$8 sm:$0x3] %vm23_vm3, %v22_v17  }
  0x7b   :  { %31 = vst.msk [vmem:[#allocation0] ss:$8 sm:$0x3] %vm30_vm4, %v29_v19  }
  0x7c   :  { %v36_v20 = vpop.permute.xlu0 %35   ;;  %v43_v21 = vpop.permute.xlu1 %42  }
  0x7d   :  { %38 = vst.msk [vmem:[#allocation0] ss:$8 sm:$0x3] %vm37_vm5, %v36_v20  }
  0x7e   :  { %45 = vst.msk [vmem:[#allocation0] ss:$8 sm:$0x3] %vm44_vm6, %v43_v21  }
  0x80   :  { %v50_v22 = vpop.permute.xlu0 %49   ;;  %v57_v23 = vpop.permute.xlu1 %56  }
  0x81   :  { %52 = vst.msk [vmem:[#allocation0] ss:$8 sm:$0x3] %vm51_vm7, %v50_v22  }
  0x82   :  { %59 = vst.msk [vmem:[#allocation0] ss:$8 sm:$0x3] %vm58_vm8, %v57_v23  }
  0x84   :  { %v64_v24 = vpop.permute.xlu0 %63   ;;  %v71_v25 = vpop.permute.xlu1 %70  }
  0x85   :  { %66 = vst.msk [vmem:[#allocation0] ss:$8 sm:$0x3] %vm65_vm9, %v64_v24  }
  0x86   :  { %73 = vst.msk [vmem:[#allocation0] ss:$8 sm:$0x3] %vm72_vm10, %v71_v25  }
  0x88   :  { %v78_v26 = vpop.permute.xlu0 %77   ;;  %v85_v27 = vpop.permute.xlu1 %84  }
  0x89   :  { %80 = vst.msk [vmem:[#allocation0] ss:$8 sm:$0x3] %vm79_vm11, %v78_v26  }
  0x8a   :  { %87 = vst.msk [vmem:[#allocation0] ss:$8 sm:$0x3] %vm86_vm12, %v85_v27  }
  0x8c   :  { %v92_v28 = vpop.permute.xlu0 %91   ;;  %v99_v29 = vpop.permute.xlu1 %98  }
  0x8d   :  { %94 = vst.msk [vmem:[#allocation0] ss:$8 sm:$0x3] %vm93_vm13, %v92_v28  }
  0x8e   :  { %101 = vst.msk [vmem:[#allocation0] ss:$8 sm:$0x3] %vm100_vm14, %v99_v29  }
  0x90   :  { %v106_v30 = vpop.permute.xlu0 %105  }
  0x91   :  { %108 = vst.msk [vmem:[#allocation0] ss:$8 sm:$0x3] %vm107_vm15, %v106_v30  }
  0x98   :  { %v112_v31 = vld [vmem:[#allocation0] sm:$0x1]  ;;  %v116_v32 = vld [vmem:[#allocation0 + $0x8] sm:$0x1] }
  0x99   :  { %114 = vst [vmem:[%s231_s1] sm:$0x1] %v112_v31  ;;  %135 = vst [vmem:[%s231_s1 + $0x1] sm:$0x1] %v116_v32 }

// kernel: deconv_forward.1
= control target key start
LH: loop header
LB: loop body
LE: loop exit
PB: predicated region body
PF: predicated region fallthrough
CT: control target
= control target key end

     0   :  { %s1104_s15 = smov 0   ;;  %s1299_s0 = inlined_call_operand.vmem [shape: bf16[2,16,128], index: 0, kind: input, shape index: {}]   ;;  %s1300_s1 = inlined_call_operand.vmem [shape: bf16[32,16], index: 1, kind: input, shape index: {}]   ;;  %s1301_s2 = inlined_call_operand.vmem [shape: bf16[3,128,240], index: 2, kind: input, shape index: {}]   ;;  %s1302_s3 = inlined_call_operand.vmem [shape: f32[1,240], index: 3, kind: input, shape index: {}]   ;;  %s1303_s4 = inlined_call_operand.vmem [shape: f32[2,30,240], index: 4, kind: output, shape index: {}]  }
   0x1 LB: > { %s847_s16 = sadd.s32 4294967295, %s1076_s15   ;;  %p851_p0 = scmp.ge.s32.totalorder %s1076_s15, 1  ;;  %s1076_s15 = sphi %s1104_s15, %s14_s15  }
   0x2   : > { %p162_p1 = scmp.lt.s32.totalorder %s1076_s15, 3 }
   0x4   : > { %p163_p2 = pnand %p851_p0, %p162_p1 }
   0x5   : > { %p188_p3 = scmp.lt.s32.totalorder (!%p163_p2), %s847_s16, 1  ;;  %v996_v0 = vld [vmem:[%s1300_s1] sm:$0xff] (!%p163_p2)   ;;  %vm221_vm0 = vcmask (!%p163_p2), 130048   ;;  %v1001_v3 = vld [vmem:[%s1301_s2 + $0x14] ss:$8 sps:$4 sm:$0xff] (!%p163_p2)   ;;  %v997_v6 = vld [vmem:[%s1300_s1 + $0x8] sm:$0xff] (!%p163_p2)  }
   0x6   : > { %166 = sbr.rel (%p163_p2) target bundleno = 497 (0x1f1), region = 36  ;;  %950 = vmatprep.mubr.msk.bf16.mxu0 (!%p163_p2), %vm221_vm0, %v996_v0  ;;  %v998_v1 = vld [vmem:[%s1301_s2 + $0x4] ss:$8 sps:$4 sm:$0xff] (!%p163_p2)   ;;  %v1000_v2 = vld [vmem:[%s1301_s2] ss:$8 sps:$4 sm:$0xff] (!%p163_p2)   ;;  %v1078_v34 = vmov (!%p163_p2), 0  }
   0x7   : > { %543 = vmatprep.subr.bf16.mxu1 (!%p163_p2), %v998_v1  ;;  %v1003_v4 = vld [vmem:[%s1301_s2 + $0x10] ss:$8 sps:$4 sm:$0xff] (!%p163_p2)   ;;  %v1006_v7 = vld [vmem:[%s1301_s2 + $0x84] ss:$8 sps:$4 sm:$0xff] (!%p163_p2)   ;;  %v1004_v8 = vld [vmem:[%s1301_s2 + $0x80] ss:$8 sps:$4 sm:$0xff] (!%p163_p2)   ;;  %575 = vmatprep.mubr.bf16.mxu1 (!%p163_p2), %v1078_v34 }
   0x8   : > { %544 = vmatpush1.bf16.msra.mxu1 (!%p163_p2), %v1000_v2  ;;  %v1007_v9 = vld [vmem:[%s1301_s2 + $0x24] ss:$8 sps:$4 sm:$0xff] (!%p163_p2)   ;;  %v1009_v10 = vld [vmem:[%s1301_s2 + $0x20] ss:$8 sps:$4 sm:$0xff] (!%p163_p2)   ;;  %v1012_v11 = vld [vmem:[%s1301_s2 + $0x94] ss:$8 sps:$4 sm:$0xff] (!%p163_p2)  }
   0x9   : > { %545 = vmatprep.subr.bf16.mxu1 (!%p163_p2), %v1001_v3  ;;  %v1013_v12 = vld [vmem:[%s1301_s2 + $0x34] ss:$8 sps:$4 sm:$0xff] (!%p163_p2)   ;;  %v1010_v13 = vld [vmem:[%s1301_s2 + $0x90] ss:$8 sps:$4 sm:$0xff] (!%p163_p2)   ;;  %v1018_v15 = vld [vmem:[%s1301_s2 + $0xa4] ss:$8 sps:$4 sm:$0xff] (!%p163_p2)  }
   0xa   : > { %v1015_v14 = vld [vmem:[%s1301_s2 + $0x30] ss:$8 sps:$4 sm:$0xff] (!%p163_p2)   ;;  %v1019_v16 = vld [vmem:[%s1301_s2 + $0x44] ss:$8 sps:$4 sm:$0xff] (!%p163_p2)   ;;  %v1016_v17 = vld [vmem:[%s1301_s2 + $0xa0] ss:$8 sps:$4 sm:$0xff] (!%p163_p2)  }
   0xb   : > { %v1021_v18 = vld [vmem:[%s1301_s2 + $0x40] ss:$8 sps:$4 sm:$0xff] (!%p163_p2)   ;;  %v1024_v19 = vld [vmem:[%s1301_s2 + $0xb4] ss:$8 sps:$4 sm:$0xff] (!%p163_p2)   ;;  %v1022_v21 = vld [vmem:[%s1301_s2 + $0xb0] ss:$8 sps:$4 sm:$0xff] (!%p163_p2)  }
   0xc   : > { %546 = vmatpush1.bf16.msra.mxu1 (!%p163_p2), %v1003_v4  ;;  %v1025_v20 = vld [vmem:[%s1301_s2 + $0x54] ss:$8 sps:$4 sm:$0xff] (!%p163_p2)   ;;  %v1027_v22 = vld [vmem:[%s1301_s2 + $0x50] ss:$8 sps:$4 sm:$0xff] (!%p163_p2)   ;;  %v1030_v23 = vld [vmem:[%s1301_s2 + $0xc4] ss:$8 sps:$4 sm:$0xff] (!%p163_p2)  }
   0xd   : > { %s1305_s16 = smov (!%p188_p3, %s847_s16), 1  ;;  %547 = vmatprep.subr.bf16.mxu1 %v1007_v9  ;;  %v1031_v24 = vld [vmem:[%s1301_s2 + $0x64] ss:$8 sps:$4 sm:$0xff]   ;;  %v1028_v25 = vld [vmem:[%s1301_s2 + $0xc0] ss:$8 sps:$4 sm:$0xff]   ;;  %vm615_vm1 = vcmask 1046528  }
   0xe   : > { %s943_s23 = sshll.u32 %s1305_s16, 3  ;;  %v1033_v26 = vld [vmem:[%s1301_s2 + $0x60] ss:$8 sps:$4 sm:$0xff]   ;;  %v1036_v27 = vld [vmem:[%s1301_s2 + $0xd4] ss:$8 sps:$4 sm:$0xff]   ;;  %s944_s27 = sshll.u32 %s1305_s16, 6 }
   0xf   : > { %s192_s28 = scalar_lea.vmem %s1299_s0, %s943_s23  ;;  %v1034_v28 = vld [vmem:[%s1301_s2 + $0xd0] ss:$8 sps:$4 sm:$0xff]   ;;  %v1037_v29 = vld [vmem:[%s1301_s2 + $0x74] ss:$8 sps:$4 sm:$0xff]   ;;  %v1042_v31 = vld [vmem:[%s1301_s2 + $0xe4] ss:$8 sps:$4 sm:$0xff]   ;;  %s1283_s30 = scalar_lea.vmem %s1303_s4, %s944_s27 }
  0x10   : > { %v995_v5 = vld [vmem:[%s192_s28] sm:$0xff]   ;;  %548 = vmatpush1.bf16.msra.mxu1 %v1009_v10  ;;  %v1039_v30 = vld [vmem:[%s1301_s2 + $0x70] ss:$8 sps:$4 sm:$0xff]   ;;  %v1048_v35 = vld [vmem:[%s1301_s2 + $0xf4] ss:$8 sps:$4 sm:$0xff]   ;;  %vm783_vm3 = vcmask 916480  }
  0x11   : > { %948 = vmatprep.subr.bf16.mxu0 %v995_v5  ;;  %549 = vmatprep.subr.bf16.mxu1 %v1013_v12  ;;  %v1040_v32 = vld [vmem:[%s1301_s2 + $0xe0] ss:$8 sps:$4 sm:$0xff]   ;;  %v1045_v33 = vld [vmem:[%s1301_s2 + $0x104] ss:$8 sps:$4 sm:$0xff]   ;;  %v1046_v36 = vld [vmem:[%s1301_s2 + $0xf0] ss:$8 sps:$4 sm:$0xff]  }
  0x12   : > { %949 = vmatpush3.bf16.msra.mxu0 %v995_v5  ;;  %v1043_v42 = vld [vmem:[%s1301_s2 + $0x100] ss:$8 sps:$4 sm:$0xff]   ;;  %v1051_v44 = vld [vmem:[%s1301_s2 + $0x114] ss:$8 sps:$4 sm:$0xff]   ;;  %v1049_v49 = vld [vmem:[%s1301_s2 + $0x110] ss:$8 sps:$4 sm:$0xff]  }
  0x13   : > { %410 = vmatprep.subr.bf16.mxu0 %v1006_v7  ;;  %v1054_v52 = vld [vmem:[%s1301_s2 + $0x124] ss:$8 sps:$4 sm:$0xff]   ;;  %vm312_vm2 = vsmask.f32 7424  ;;  %v1052_v56 = vld [vmem:[%s1301_s2 + $0x120] ss:$8 sps:$4 sm:$0xff]  }
  0x14   : > { %550 = vmatpush1.bf16.msra.mxu1 %v1015_v14  ;;  %v1057_v58 = vld [vmem:[%s1301_s2 + $0x134] ss:$8 sps:$4 sm:$0xff]   ;;  %v1055_v59 = vld [vmem:[%s1301_s2 + $0x130] ss:$8 sps:$4 sm:$0xff]   ;;  %v1060_v60 = vld [vmem:[%s1301_s2 + $0x144] ss:$8 sps:$4 sm:$0xff]  }
  0x15   : > { %951 = vmatmul.mubr.msk.bf16.vlgmr.msra.gmra.mrb[0].mxu0 %vm221_vm0, %v997_v6  ;;  %551 = vmatprep.subr.bf16.mxu1 %v1019_v16  ;;  %v1058_v63 = vld [vmem:[%s1301_s2 + $0x140] ss:$8 sps:$4 sm:$0xff]   ;;  %v1063_v0 = vld [vmem:[%s1301_s2 + $0x154] ss:$8 sps:$4 sm:$0xff]   ;;  %v1061_v1 = vld [vmem:[%s1301_s2 + $0x150] ss:$8 sps:$4 sm:$0xff]  }
  0x16   : > { %411 = vmatpush1.bf16.msra.mxu0 %v1004_v8  ;;  %442 = vmatprep.mubr.bf16.mxu0 %v1078_v34  ;;  %v1066_v2 = vld [vmem:[%s1301_s2 + $0x164] ss:$8 sps:$4 sm:$0xff]   ;;  %v1064_v3 = vld [vmem:[%s1301_s2 + $0x160] ss:$8 sps:$4 sm:$0xff]   ;;  %v1069_v4 = vld [vmem:[%s1301_s2 + $0x174] ss:$8 sps:$4 sm:$0xff]  }
  0x17   : > { %412 = vmatprep.subr.bf16.mxu0 %v1012_v11  ;;  %v1067_v5 = vld [vmem:[%s1301_s2 + $0x170] ss:$8 sps:$4 sm:$0xff]   ;;  %vm790_vm4 = vcmask 914432  }
  0x18   : > { %552 = vmatpush1.bf16.msra.mxu1 %v1021_v18 }
  0x19   : > { %553 = vmatprep.subr.bf16.mxu1 %v1025_v20 }
  0x1a   : > { %413 = vmatpush1.bf16.msra.mxu0 %v1010_v13 }
  0x1b   : > { %414 = vmatprep.subr.bf16.mxu0 %v1018_v15 }
  0x1c   : > { %554 = vmatpush1.bf16.msra.mxu1 %v1027_v22  ;;  %v764_v22 = vlaneseq }
  0x1d   : > { %555 = vmatprep.subr.bf16.mxu1 %v1031_v24 }
  0x1e   : > { %415 = vmatpush1.bf16.msra.mxu0 %v1016_v17 }
  0x1f   : > { %416 = vmatprep.subr.bf16.mxu0 %v1024_v19 }
  0x20   : > { %556 = vmatpush1.bf16.msra.mxu1 %v1033_v26 }
  0x21   : > { %557 = vmatprep.subr.bf16.mxu1 %v1037_v29 }
  0x22   : > { %417 = vmatpush1.bf16.msra.mxu0 %v1022_v21 }
  0x23   : > { %418 = vmatprep.subr.bf16.mxu0 %v1030_v23  ;;  %v765_v23 = vshrl.u32 %v764_v22, 7 }
  0x24   : > { %558 = vmatpush1.bf16.msra.mxu1 %v1039_v30 }
  0x25   : > { %954 = vmatprep.subr.bf16.mxu1 %v1045_v33  ;;  %v766_v24 = vsub.s32 0, %v765_v23  ;;  %v770_v26 = vsub.s32 1, %v765_v23 }
  0x26   : > { %419 = vmatpush1.bf16.msra.mxu0 %v1028_v25  ;;  %v762_v25 = vld [vmem:[%s1302_s3] sm:$0x3] }
  0x27   : > { %420 = vmatprep.subr.bf16.mxu0 %v1036_v27  ;;  %v767_v27 = vrot.slane %v762_v25, %v766_v24  ;;  %v771_v29 = vrot.slane %v762_v25, %v770_v26 }
  0x2a   : > { %421 = vmatpush1.bf16.msra.mxu0 %v1034_v28 }
  0x2b   : > { %422 = vmatprep.subr.bf16.mxu0 %v1042_v31 }
  0x2e   : > { %423 = vmatpush1.bf16.msra.mxu0 %v1040_v32 }
  0x2f   : > { %424 = vmatprep.subr.bf16.mxu0 %v1048_v35 }
  0x32   : > { %425 = vmatpush1.bf16.msra.mxu0 %v1046_v36 }
  0x33   : > { %701 = vmatprep.subr.bf16.mxu0 %v1045_v33 }
  0xe8   : > { %v952_v37 = vpop.f32.mrb[0].mxu0 }
  0xe9   : > { %v262_v38 = vpop.f32.mrb[1].mxu0 }
  0xea   : > { %v953_v39 = vpop.f32.mrb[2].mxu0 }
  0xeb   : > { %v1225_v40 = vpack.c.bf16 %v953_v39, %v952_v37  ;;  %v265_v41 = vpop.f32.mrb[3].mxu0 }
  0xec   : > { %v277_v43 = vpack.c.bf16 %v265_v41, %v262_v38 }
  0xed   : > { %v617_v45 = vrot.slane %v1225_v40, 1  ;;  %v321_v48 = vshll.u32 %v1225_v40, 16  ;;  %v325_v61 = vshrl.u32 %v1225_v40, 16 }
  0xee   : > { %v316_v46 = vshll.u32 %v277_v43, 16  ;;  %v616_v47 = vrot.slane %v277_v43, 1  ;;  %576 = vmatmul.mubr.bf16.vlgmr.msra.gmra.mrb[0].mxu1 %v277_v43  ;;  %v314_v50 = vshrl.u32 %v277_v43, 16 }
  0xef   : > { %962 = vmatpush1.bf16.msra.mxu1 %v1043_v42  ;;  %585 = vmatprep.mubr.bf16.mxu1 %v1078_v34  ;;  %v323_v55 = vrot.slane %v321_v48, 1 }
  0xf0   : > { %v318_v51 = vrot.slane %v316_v46, 1  ;;  %955 = vmatprep.subr.bf16.mxu1 %v1051_v44  ;;  %v618_v53 = vsel %vm615_vm1, %v616_v47, %v617_v45 }
  0xf1   : > { %v327_v62 = vor.u32 %v325_v61, %v323_v55 }
  0xf2   : > { %v319_v54 = vor.u32 %v318_v51, %v314_v50 }
  0xf3   : > { %963 = vmatpush1.bf16.msra.mxu1 %v1049_v49 }
  0xf4   : > { %v324_v57 = vsel %vm312_vm2, %v319_v54, %v323_v55  ;;  %956 = vmatprep.subr.bf16.mxu1 %v1054_v52 }
  0xf5   : > { %443 = vmatmul.mubr.bf16.vlgmr.msra.gmra.mrb[4].mxu0 %v324_v57 }
  0xf6   : > { %702 = vmatpush1.bf16.msra.mxu0 %v1043_v42  ;;  %586 = vmatmul.mubr.bf16.gmra.mrb[4].mxu1 %v1225_v40 }
  0xf7   : > { %964 = vmatpush1.bf16.msra.mxu1 %v1052_v56  ;;  %703 = vmatprep.subr.bf16.mxu0 %v1051_v44 }
  0xf8   : > { %957 = vmatprep.subr.bf16.mxu1 %v1057_v58  ;;  %452 = vmatprep.mubr.bf16.mxu0 %v1078_v34 }
  0xf9   : > { %743 = vmatprep.mubr.bf16.mxu1 %v1078_v34 }
  0xfa   : > { %704 = vmatpush1.bf16.msra.mxu0 %v1049_v49 }
  0xfb   : > { %965 = vmatpush1.bf16.msra.mxu1 %v1055_v59  ;;  %705 = vmatprep.subr.bf16.mxu0 %v1054_v52 }
  0xfc   : > { %958 = vmatprep.subr.bf16.mxu1 %v1060_v60 }
  0xfd   : > { %453 = vmatmul.mubr.bf16.gmra.mrb[8].mxu0 %v327_v62 }
  0xfe   : > { %706 = vmatpush1.bf16.msra.mxu0 %v1052_v56  ;;  %733 = vmatprep.mubr.bf16.mxu0 %v1078_v34 }
  0xff   : > { %966 = vmatpush1.bf16.msra.mxu1 %v1058_v63  ;;  %707 = vmatprep.subr.bf16.mxu0 %v1057_v58 }
 0x100   : > { %959 = vmatprep.subr.bf16.mxu1 %v1063_v0 }
 0x102   : > { %708 = vmatpush1.bf16.msra.mxu0 %v1055_v59 }
 0x103   : > { %967 = vmatpush1.bf16.msra.mxu1 %v1061_v1  ;;  %709 = vmatprep.subr.bf16.mxu0 %v1060_v60 }
 0x104   : > { %960 = vmatprep.subr.bf16.mxu1 %v1066_v2 }
 0x106   : > { %710 = vmatpush1.bf16.msra.mxu0 %v1058_v63 }
 0x107   : > { %968 = vmatpush1.bf16.msra.mxu1 %v1064_v3  ;;  %711 = vmatprep.subr.bf16.mxu0 %v1063_v0 }
 0x108   : > { %961 = vmatprep.subr.bf16.mxu1 %v1069_v4 }
 0x10a   : > { %712 = vmatpush1.bf16.msra.mxu0 %v1061_v1 }
 0x10b   : > { %969 = vmatpush1.bf16.msra.mxu1 %v1067_v5  ;;  %713 = vmatprep.subr.bf16.mxu0 %v1066_v2 }
 0x10e   : > { %714 = vmatpush1.bf16.msra.mxu0 %v1064_v3  ;;  %744 = vmatmul.mubr.bf16.vlgmr.msra.gmra.mrb[4].mxu1 %v617_v45 }
 0x10f   : > { %715 = vmatprep.subr.bf16.mxu0 %v1069_v4 }
 0x112   : > { %716 = vmatpush1.bf16.msra.mxu0 %v1067_v5 }
 0x115   : > { %734 = vmatmul.mubr.bf16.vlgmr.msra.gmra.mrb[12].mxu0 %v618_v53 }
 0x1c1   : > { %v577_v6 = vpop.f32.mrb[0].mxu1 }
 0x1c2   : > { %v579_v7 = vpop.f32.mrb[1].mxu1 }
 0x1c3   : > { %v581_v8 = vpop.f32.mrb[2].mxu1 }
 0x1c4   : > { %v583_v9 = vpop.f32.mrb[3].mxu1 }
 0x1c8   : > { %v444_v10 = vpop.f32.mrb[4].mxu0 }
 0x1c9   : > { %v578_v11 = vadd.f32 %v577_v6, %v444_v10  ;;  %v446_v12 = vpop.f32.mrb[5].mxu0 }
 0x1ca   : > { %v580_v13 = vadd.f32 %v579_v7, %v446_v12  ;;  %v448_v14 = vpop.f32.mrb[6].mxu0 }
 0x1cb   : > { %v582_v15 = vadd.f32 %v581_v8, %v448_v14  ;;  %v450_v16 = vpop.f32.mrb[7].mxu0 }
 0x1cc   : > { %v584_v17 = vadd.f32 %v583_v9, %v450_v16 }
 0x1d0   : > { %v454_v18 = vpop.f32.mrb[8].mxu0 }
 0x1d1   : > { %v456_v19 = vpop.f32.mrb[9].mxu0 }
 0x1d2   : > { %v458_v20 = vpop.f32.mrb[10].mxu0 }
 0x1d3   : > { %v460_v21 = vpop.f32.mrb[11].mxu0 }
 0x1e1   : > { %v745_v28 = vpop.f32.mrb[4].mxu1 }
 0x1e2   : > { %v978_v30 = vadd.f32 %v745_v28, %v454_v18  ;;  %v747_v31 = vpop.f32.mrb[5].mxu1 }
 0x1e3   : > { %v979_v32 = vadd.f32 %v747_v31, %v456_v19  ;;  %v749_v33 = vpop.f32.mrb[6].mxu1 }
 0x1e4   : > { %v778_v34 = vadd.f32 %v978_v30, %v767_v27  ;;  %v980_v35 = vadd.f32 %v749_v33, %v458_v20  ;;  %v751_v36 = vpop.f32.mrb[7].mxu1 }
 0x1e5   : > { %v779_v37 = vadd.f32 %v979_v32, %v771_v29  ;;  %v981_v38 = vadd.f32 %v751_v36, %v460_v21 }
 0x1e6   : > { %787 = vst [vmem:[%s1283_s30 + $0x20] sm:$0xff] %v778_v34  ;;  %v780_v39 = vadd.f32 %v980_v35, %v767_v27 }
 0x1e7   : > { %788 = vst.msk [vmem:[%s1283_s30 + $0x28] sm:$0xff] %vm783_vm3, %v779_v37  ;;  %v781_v40 = vadd.f32 %v981_v38, %v771_v29 }
 0x1e8   : > { %789 = vst [vmem:[%s1283_s30 + $0x30] sm:$0x3f] %v780_v39  ;;  %v735_v41 = vpop.f32.mrb[12].mxu0 }
 0x1e9   : > { %791 = vst.msk [vmem:[%s1283_s30 + $0x38] sm:$0x3f] %vm790_vm4, %v781_v40  ;;  %v754_v42 = vadd.f32 %v735_v41, %v578_v11  ;;  %v737_v43 = vpop.f32.mrb[13].mxu0 }
 0x1ea   : > { %v755_v44 = vadd.f32 %v737_v43, %v580_v13  ;;  %v739_v45 = vpop.f32.mrb[14].mxu0 }
 0x1eb   : > { %v774_v46 = vadd.f32 %v767_v27, %v754_v42  ;;  %v756_v47 = vadd.f32 %v739_v45, %v582_v15  ;;  %v741_v48 = vpop.f32.mrb[15].mxu0 }
 0x1ec   : > { %v775_v49 = vadd.f32 %v771_v29, %v755_v44  ;;  %v757_v50 = vadd.f32 %v741_v48, %v584_v17 }
 0x1ed   : > { %782 = vst [vmem:[%s1283_s30] sm:$0xff] %v774_v46  ;;  %v776_v51 = vadd.f32 %v767_v27, %v756_v47 }
 0x1ee   : > { %784 = vst.msk [vmem:[%s1283_s30 + $0x8] sm:$0xff] %vm783_vm3, %v775_v49  ;;  %v777_v52 = vadd.f32 %v771_v29, %v757_v50 }
 0x1ef   : > { %785 = vst [vmem:[%s1283_s30 + $0x10] sm:$0xff] %v776_v51 }
 0x1f0   : > { %786 = vst.msk [vmem:[%s1283_s30 + $0x18] sm:$0xff] %vm783_vm3, %v777_v52 }
 0x1f1 PF: > { %s14_s15 = sadd.s32 1, %s1076_s15  }
 0x1f2   : > { %p11_p4 = scmp.ge.s32.totalorder %s14_s15, 4  }
 0x1f4   :  { %13 = sbr.rel (!%p11_p4) target bundleno = 1 (0x1), region = 68 }

</bundles_post_ra>
